<compile_context>
chip_gen: v7x
topology: tpu7x:2x2x1
jax: 0.10.0
libtpu: 0.0.40
codegen_flags: <defaults>
</compile_context>

<pallas_src>
import jax
import jax.numpy as jnp
import numpy as np
from jax.experimental import pallas as pl
from jax.experimental.pallas import tpu as pltpu


# ----------------------------------------------------------------------------
# Glue: sparsemax along an axis (Martins & Astudillo, 2016) — parameter only.
# ----------------------------------------------------------------------------
def sparsemax(z, axis):
    z = jnp.moveaxis(z, axis, -1)
    z_sorted = jnp.sort(z, axis=-1)[..., ::-1]
    k = jnp.arange(1, z.shape[-1] + 1, dtype=z.dtype)
    z_cumsum = jnp.cumsum(z_sorted, axis=-1)
    support = 1.0 + k * z_sorted > z_cumsum
    k_support = jnp.sum(support.astype(jnp.int32), axis=-1, keepdims=True)
    tau_sum = jnp.take_along_axis(z_cumsum, k_support - 1, axis=-1)
    tau = (tau_sum - 1.0) / k_support.astype(z.dtype)
    out = jnp.maximum(z - tau, 0.0)
    return jnp.moveaxis(out, -1, axis)


# ----------------------------------------------------------------------------
# Glue: fold tree axis into lanes, fold BN affine + tree_weight/mean into the
# parameters, and pack everything into two slabs (parameter-only transform).
# ----------------------------------------------------------------------------
def fold_params(proj, cut, w1, b1, w2, b2, tw, gamma, beta):
    """proj:(T,F,S) cut:(T,1,S) w1:(T,S,S) b1:(T,1,S) w2:(T,S,O) b2,tw:(T,1,O)
    gamma,beta:(F,).  Returns (w_slab:(F+2TS,TS), vec_slab:(1,2TS+O), O)."""
    T, F, S = proj.shape
    O = w2.shape[-1]
    TS = T * S
    hp = jax.lax.Precision.HIGHEST

    # Lane-concatenate per-tree params (tree-major ordering along lanes).
    p_all = jnp.transpose(proj, (1, 0, 2)).reshape(F, TS)
    cut_all = cut.reshape(1, TS)
    b1_all = b1.reshape(1, TS)

    # Fold BN affine:  (xhat*gamma + beta) @ P  ==  xhat @ (gamma[:,None]*P) + beta@P
    p_scaled = p_all * gamma.reshape(F, 1)
    cut_adj = cut_all - jnp.dot(beta.reshape(1, F), p_all, precision=hp)

    # Block-diagonal first linear layer: lanes t*S:(t+1)*S only see tree t.
    w1_bd = (jnp.eye(T, dtype=w1.dtype)[:, None, :, None]
             * w1[:, :, None, :]).reshape(TS, TS)

    # Fold tree_weight and the mean over trees into the second linear layer:
    #   mean_t((o1_t @ w2_t + b2_t) * tw_t)
    #     = o1_all @ stack_t(w2_t * tw_t / T)  +  sum_t(b2_t * tw_t / T)
    tw_scaled = tw / T                                    # (T, 1, O)
    w2_comb = (w2 * tw_scaled).reshape(TS, O)
    b2_comb = (b2 * tw_scaled).sum(axis=0).reshape(1, O)

    # Pack: one weight slab (sublane-stacked) + one vector slab (lane-concat).
    w2_pad = jnp.pad(w2_comb, ((0, 0), (0, TS - O)))      # zero-pad lanes to TS
    w_slab = jnp.concatenate([p_scaled, w1_bd, w2_pad], axis=0)   # (F+2TS, TS)
    vec_slab = jnp.concatenate([cut_adj, b1_all, b2_comb], axis=1)  # (1, 2TS+O)
    return w_slab, vec_slab, O


# ----------------------------------------------------------------------------
# Pallas kernel: one invocation (no grid), everything resident in VMEM.
# ----------------------------------------------------------------------------
def _make_cart_kernel(F, TS, O):
    hp = jax.lax.Precision.HIGHEST

    def cart_kernel(x_ref, w_ref, vec_ref, out_ref):
        # BatchNorm1d, training semantics: batch statistics, biased variance.
        # (Affine gamma/beta already folded into the weight/vector slabs.)
        x = x_ref[...]                                            # (B, F)
        mean = jnp.mean(x, axis=0, keepdims=True)
        var = jnp.mean((x - mean) ** 2, axis=0, keepdims=True)
        xn = (x - mean) * jax.lax.rsqrt(var + 1e-5)

        # Static slices of the packed slabs (free).
        cut = vec_ref[:, :TS]
        b1 = vec_ref[:, TS:2 * TS]
        b2 = vec_ref[:, 2 * TS:]

        # All trees at once along the lane axis: 3 dense MXU matmuls.
        xp = jnp.dot(xn, w_ref[:F, :],
                     preferred_element_type=jnp.float32, precision=hp)
        score = jax.nn.sigmoid(xp - cut)                          # (B, TS)
        o1 = jnp.maximum(
            jnp.dot(score, w_ref[F:F + TS, :],
                    preferred_element_type=jnp.float32, precision=hp) + b1,
            0.0)                                                  # (B, TS)
        # Final matmul also performs the tree-weighted mean (folded into W2);
        # W2 is zero-padded to TS lanes so the matmul stays lane-dense.
        o2 = jnp.dot(o1, w_ref[F + TS:, :],
                     preferred_element_type=jnp.float32, precision=hp)
        out_ref[...] = o2[:, :O] + b2                             # (B, O)

    return cart_kernel


def cart_forward(x, fused_params):
    """x: (B, n_features) float32; fused_params from fold_params."""
    w_slab, vec_slab, O = fused_params
    B, F = x.shape
    TS = w_slab.shape[1]

    flops = 2 * B * TS * (F + TS + TS) + 12 * B * (F + TS) + 2 * B * O
    bytes_accessed = 4 * (x.size + w_slab.size + vec_slab.size + B * O)
    cost = pl.CostEstimate(flops=flops, transcendentals=B * TS,
                           bytes_accessed=bytes_accessed)

    vmem = pltpu.MemorySpace.VMEM
    return pl.pallas_call(
        _make_cart_kernel(F, TS, O),
        out_shape=jax.ShapeDtypeStruct((B, O), jnp.float32),
        in_specs=[
            pl.BlockSpec(memory_space=vmem),    # x        (B, F)
            pl.BlockSpec(memory_space=vmem),    # w_slab   (F+2TS, TS)
            pl.BlockSpec(memory_space=vmem),    # vec_slab (1, 2TS+O)
        ],
        out_specs=pl.BlockSpec(memory_space=vmem),
        cost_estimate=cost,
    )(x, w_slab, vec_slab)


# ----------------------------------------------------------------------------
# Pure-JAX reference (mirrors the PyTorch forward in training mode).
# ----------------------------------------------------------------------------
def cart_reference(x, gamma, beta, proj, cut, w1, b1, w2, b2, tw):
    hp = jax.lax.Precision.HIGHEST
    mean = jnp.mean(x, axis=0, keepdims=True)
    var = jnp.mean((x - mean) ** 2, axis=0, keepdims=True)
    xn = (x - mean) / jnp.sqrt(var + 1e-5) * gamma + beta
    xp = jnp.einsum('bf,nfs->nbs', xn, proj, precision=hp)
    score = jax.nn.sigmoid(xp - cut)
    o1 = jax.nn.relu(jnp.einsum('nbk,nko->nbo', score, w1, precision=hp) + b1)
    o2 = jnp.einsum('nbk,nko->nbo', o1, w2, precision=hp) + b2
    return jnp.mean(o2 * tw, axis=0)


if __name__ == "__main__":
    # Small shapes consistent with the module's __init__ (projection branch).
    B, n_features, n_selected, n_out, n_trees = 8, 16, 8, 4, 4
    mask_type = "sparsemax"
    # TODO(synk): mask_type == "entmax" (entmax15) is not implemented, matching
    # only the sparsemax branch of the reference module.

    key = jax.random.PRNGKey(0)
    k = jax.random.split(key, 10)
    x = jax.random.normal(k[0], (B, n_features), jnp.float32)

    # Deterministic parameter init (torch.randn analogue).
    feature_selection_matrix = jax.random.normal(
        k[1], (n_trees, n_features, n_selected), jnp.float32)
    cut_points = jax.random.normal(k[2], (n_trees, 1, n_selected), jnp.float32)
    linear_layer1 = jax.random.normal(
        k[3], (n_trees, n_selected, n_selected), jnp.float32)
    bias1 = jax.random.normal(k[4], (n_trees, 1, n_selected), jnp.float32)
    linear_layer2 = jax.random.normal(
        k[5], (n_trees, n_selected, n_out), jnp.float32)
    bias2 = jax.random.normal(k[6], (n_trees, 1, n_out), jnp.float32)
    tree_weight = jax.random.normal(k[7], (n_trees, 1, n_out), jnp.float32)

    # BatchNorm1d affine (non-trivial values to exercise the parameter fold;
    # PyTorch defaults would be gamma=1, beta=0).
    gamma = 1.0 + 0.1 * jax.random.normal(k[8], (n_features,), jnp.float32)
    beta = 0.1 * jax.random.normal(k[9], (n_features,), jnp.float32)

    # Parameter-only transforms (glue): sparsemax over the feature axis, then
    # fold trees into lanes, fold BN affine + tree_weight/mean, pack slabs.
    assert mask_type == "sparsemax"
    projection_matrix = sparsemax(feature_selection_matrix, axis=1)
    fused = fold_params(projection_matrix, cut_points,
                        linear_layer1, bias1,
                        linear_layer2, bias2, tree_weight,
                        gamma, beta)

    out = cart_forward(x, fused)
    out = jax.block_until_ready(out)

    ref = cart_reference(x, gamma, beta, projection_matrix, cut_points,
                         linear_layer1, bias1, linear_layer2, bias2,
                         tree_weight)
    np.testing.assert_allclose(np.asarray(out), np.asarray(ref),
                               rtol=1e-4, atol=1e-4)
    print("KERNEL_OK")
</pallas_src>

<mosaic_0001>
module attributes {stable_mosaic.version = 11 : i64} {
  func.func @cart_kernel(%arg0: memref<8x16xf32, #tpu.memory_space<vmem>>, %arg1: memref<80x32xf32, #tpu.memory_space<vmem>>, %arg2: memref<1x68xf32, #tpu.memory_space<vmem>>, %arg3: memref<8x4xf32, #tpu.memory_space<vmem>>) attributes {dimension_semantics = [], scalar_prefetch = 0 : i64, scratch_operands = 0 : i64, tpu.core_type = #tpu.core_type<tc>} {
    %c0 = arith.constant 0 : index
    %c0_0 = arith.constant 0 : index
    %0 = vector.load %arg0[%c0, %c0_0] : memref<8x16xf32, #tpu.memory_space<vmem>>, vector<8x16xf32>
    %cst = arith.constant dense<0.000000e+00> : vector<16xf32>
    %1 = vector.multi_reduction <add>, %0, %cst [0] : vector<8x16xf32> to vector<16xf32>
    %2 = vector.shape_cast %1 : vector<16xf32> to vector<1x16xf32>
    %cst_1 = arith.constant 8.000000e+00 : f32
    %3 = vector.broadcast %cst_1 : f32 to vector<1x16xf32>
    %4 = arith.divf %2, %3 : vector<1x16xf32>
    %5 = vector.broadcast %4 : vector<1x16xf32> to vector<8x16xf32>
    %6 = arith.subf %0, %5 : vector<8x16xf32>
    %7 = arith.mulf %6, %6 : vector<8x16xf32>
    %cst_2 = arith.constant dense<0.000000e+00> : vector<16xf32>
    %8 = vector.multi_reduction <add>, %7, %cst_2 [0] : vector<8x16xf32> to vector<16xf32>
    %9 = vector.shape_cast %8 : vector<16xf32> to vector<1x16xf32>
    %cst_3 = arith.constant 8.000000e+00 : f32
    %10 = vector.broadcast %cst_3 : f32 to vector<1x16xf32>
    %11 = arith.divf %9, %10 : vector<1x16xf32>
    %12 = vector.broadcast %4 : vector<1x16xf32> to vector<8x16xf32>
    %13 = arith.subf %0, %12 : vector<8x16xf32>
    %cst_4 = arith.constant 9.99999974E-6 : f32
    %14 = vector.broadcast %cst_4 : f32 to vector<1x16xf32>
    %15 = arith.addf %11, %14 : vector<1x16xf32>
    %16 = math.rsqrt %15 : vector<1x16xf32>
    %17 = vector.broadcast %16 : vector<1x16xf32> to vector<8x16xf32>
    %18 = arith.mulf %13, %17 : vector<8x16xf32>
    %c0_5 = arith.constant 0 : index
    %c0_6 = arith.constant 0 : index
    %19 = vector.load %arg2[%c0_5, %c0_6] : memref<1x68xf32, #tpu.memory_space<vmem>>, vector<1x32xf32>
    %c0_7 = arith.constant 0 : index
    %c32 = arith.constant 32 : index
    %20 = vector.load %arg2[%c0_7, %c32] : memref<1x68xf32, #tpu.memory_space<vmem>>, vector<1x32xf32>
    %c0_8 = arith.constant 0 : index
    %c64 = arith.constant 64 : index
    %21 = vector.load %arg2[%c0_8, %c64] : memref<1x68xf32, #tpu.memory_space<vmem>>, vector<1x4xf32>
    %c0_9 = arith.constant 0 : index
    %c0_10 = arith.constant 0 : index
    %22 = vector.load %arg1[%c0_9, %c0_10] : memref<80x32xf32, #tpu.memory_space<vmem>>, vector<16x32xf32>
    %cst_11 = arith.constant dense<0.000000e+00> : vector<8x32xf32>
    %23 = tpu.matmul %18, %22, %cst_11 {dimension_numbers = #tpu.dot_dimension_numbers<[1], [0], [0], [1], [0, 0, 1, 1], [], []>, precision = #tpu.contract_precision<fp32>} : vector<8x16xf32>, vector<16x32xf32>, vector<8x32xf32> -> vector<8x32xf32>
    %24 = vector.broadcast %19 : vector<1x32xf32> to vector<8x32xf32>
    %25 = arith.subf %23, %24 : vector<8x32xf32>
    %26 = arith.negf %25 : vector<8x32xf32>
    %27 = math.exp %26 : vector<8x32xf32>
    %cst_12 = arith.constant 1.000000e+00 : f32
    %28 = vector.broadcast %cst_12 : f32 to vector<8x32xf32>
    %29 = arith.addf %28, %27 : vector<8x32xf32>
    %30 = arith.divf %28, %29 : vector<8x32xf32>
    %c16 = arith.constant 16 : index
    %c0_13 = arith.constant 0 : index
    %31 = vector.load %arg1[%c16, %c0_13] : memref<80x32xf32, #tpu.memory_space<vmem>>, vector<32x32xf32>
    %cst_14 = arith.constant dense<0.000000e+00> : vector<8x32xf32>
    %32 = tpu.matmul %30, %31, %cst_14 {dimension_numbers = #tpu.dot_dimension_numbers<[1], [0], [0], [1], [0, 0, 1, 1], [], []>, precision = #tpu.contract_precision<fp32>} : vector<8x32xf32>, vector<32x32xf32>, vector<8x32xf32> -> vector<8x32xf32>
    %33 = vector.broadcast %20 : vector<1x32xf32> to vector<8x32xf32>
    %34 = arith.addf %32, %33 : vector<8x32xf32>
    %cst_15 = arith.constant 0.000000e+00 : f32
    %35 = vector.broadcast %cst_15 : f32 to vector<8x32xf32>
    %36 = arith.maximumf %34, %35 : vector<8x32xf32>
    %c48 = arith.constant 48 : index
    %c0_16 = arith.constant 0 : index
    %37 = vector.load %arg1[%c48, %c0_16] : memref<80x32xf32, #tpu.memory_space<vmem>>, vector<32x32xf32>
    %cst_17 = arith.constant dense<0.000000e+00> : vector<8x32xf32>
    %38 = tpu.matmul %36, %37, %cst_17 {dimension_numbers = #tpu.dot_dimension_numbers<[1], [0], [0], [1], [0, 0, 1, 1], [], []>, precision = #tpu.contract_precision<fp32>} : vector<8x32xf32>, vector<32x32xf32>, vector<8x32xf32> -> vector<8x32xf32>
    %39 = vector.extract_strided_slice %38 {offsets = [0, 0], sizes = [8, 4], strides = [1, 1]} : vector<8x32xf32> to vector<8x4xf32>
    %40 = vector.broadcast %21 : vector<1x4xf32> to vector<8x4xf32>
    %41 = arith.addf %39, %40 : vector<8x4xf32>
    %c0_18 = arith.constant 0 : index
    %c0_19 = arith.constant 0 : index
    %42 = vector.load %arg3[%c0_18, %c0_19] : memref<8x4xf32, #tpu.memory_space<vmem>>, vector<8x4xf32>
    tpu.vector_store %arg3[%c0_18, %c0_19], %41 {strides = array<i32>} : memref<8x4xf32, #tpu.memory_space<vmem>>, vector<8x4xf32>,
    return
  }
}

</mosaic_0001>

<bundles_post_ra>
// kernel: tpu_custom_call.1
= control target key start
LH: loop header
LB: loop body
LE: loop exit
PB: predicated region body
PF: predicated region fallthrough
CT: control target
= control target key end

     0   :  { %vm15_vm0 = vcmask 130048   ;;  %v1890_v0 = vmov 0.0|0.0   ;;  %vm1891_vm1 = vmmov 0   ;;  %v1892_v3 = vmov 0.0   ;;  %s1893_s27 = smov 96   ;;  %s2040_s1 = inlined_call_operand.vmem [shape: f32[80,32], index: 1, kind: input, shape index: {}]   ;;  %s2041_s0 = inlined_call_operand.vmem [shape: f32[8,16], index: 0, kind: input, shape index: {}]   ;;  %s2042_s2 = inlined_call_operand.vmem [shape: f32[1,68], index: 2, kind: input, shape index: {}]   ;;  %s2043_s3 = inlined_call_operand.vmem [shape: f32[8,4], index: 3, kind: output, shape index: {}]  }
   0x1   :  { %1772 = vmatprep.subr.bf16.mxu0 %v1890_v0  ;;  %v39_v1 = vld [vmem:[%s2040_s1] sm:$0xff]  ;;  %v40_v2 = vld [vmem:[%s2040_s1 + $0x8] sm:$0xff]  ;;  %1606 = vmatprep.mubr.msk.f32.mxu0 %vm1891_vm1, %v1892_v3  ;;  %v516_v46 = vld [vmem:[%s2040_s1 + $0x10] sm:$0xff]  ;;  %vm523_vm2 = vcmask 261120   ;;  %vm1509_vm3 = vcmask 31744  }
   0x2   :  { %v14_v4 = vld [vmem:[%s2041_s0] sm:$0xff]  ;;  %v45_v5 = vand.u32 4294901760, %v39_v1  ;;  %v48_v6 = vand.u32 4294901760, %v40_v2  ;;  %1769 = vmatprep.subr.bf16.mxu1 %v1890_v0  ;;  %1599 = vmatprep.mubr.msk.f32.mxu1 %vm1891_vm1, %v1892_v3  ;;  %v517_v47 = vld [vmem:[%s2040_s1 + $0x18] sm:$0xff]  ;;  %v528_v49 = vand.u32 4294901760, %v516_v46  ;;  %v519_v51 = vld [vmem:[%s2040_s1 + $0x28] sm:$0xff] }
   0x3   :  { %v16_v7 = vsel %vm15_vm0, %v14_v4, 0.0  ;;  %v518_v48 = vld [vmem:[%s2040_s1 + $0x20] sm:$0xff]  ;;  %v531_v50 = vand.u32 4294901760, %v517_v47  ;;  %v537_v53 = vand.u32 4294901760, %v519_v51 }
   0x4   :  { %v17_v8 = vrot.slane %v16_v7, 4  ;;  %v123_v9 = vsub.f32 %v39_v1, %v45_v5  ;;  %v130_v10 = vsub.f32 %v40_v2, %v48_v6  ;;  %v1770_v11 = vpack.c.bf16 %v48_v6, %v45_v5 }
   0x5   :  { %v534_v52 = vand.u32 4294901760, %v518_v48  ;;  %v1963_v54 = vpack.c.bf16 %v531_v50, %v528_v49  ;;  %v608_v55 = vsub.f32 %v516_v46, %v528_v49  ;;  %v615_v56 = vsub.f32 %v517_v47, %v531_v50 }
   0x6   :  { %v18_v12 = vadd.f32 %v17_v8, %v16_v7  ;;  %v124_v13 = vand.u32 4294901760, %v123_v9  ;;  %v131_v14 = vand.u32 4294901760, %v130_v10  ;;  %1771 = vmatpush3.bf16.msra.mxu1 %v1770_v11  ;;  %v1776_v39 = vpack.c.bf16 %v130_v10, %v123_v9 }
   0x7   :  { %1787 = vmatprep.subr.bf16.mxu1 %v1890_v0  ;;  %v622_v57 = vsub.f32 %v518_v48, %v534_v52  ;;  %v629_v58 = vsub.f32 %v519_v51, %v537_v53  ;;  %v1966_v59 = vpack.c.bf16 %v537_v53, %v534_v52  ;;  %v609_v60 = vand.u32 4294901760, %v608_v55 }
   0x8   :  { %v19_v15 = vrot.slane %v18_v12, 2  ;;  %v125_v16 = vsub.f32 %v123_v9, %v124_v13  ;;  %v132_v17 = vsub.f32 %v130_v10, %v131_v14  ;;  %v1782_v45 = vpack.c.bf16 %v131_v14, %v124_v13 }
   0x9   :  { %v616_v61 = vand.u32 4294901760, %v615_v56  ;;  %v610_v62 = vsub.f32 %v608_v55, %v609_v60  ;;  %v630_v5 = vand.u32 4294901760, %v629_v58  ;;  %v1803_v13 = vpack.c.bf16 %v629_v58, %v622_v57 }
   0xa   :  { %v20_v18 = vadd.f32 %v19_v15, %v18_v12  ;;  %v126_v19 = vand.u32 4294901760, %v125_v16  ;;  %v133_v20 = vand.u32 4294901760, %v132_v17  ;;  %v1800_v12 = vpack.c.bf16 %v615_v56, %v608_v55  ;;  %v1974_v16 = vld [vmem:[%s2042_s2] ss:$0 sm:$0xff] }
   0xb   :  { %v617_v63 = vsub.f32 %v615_v56, %v616_v61  ;;  %v611_v1 = vand.u32 4294901760, %v610_v62  ;;  %v631_v8 = vsub.f32 %v629_v58, %v630_v5  ;;  %v1812_v14 = vpack.c.bf16 %v616_v61, %v609_v60  ;;  %520 = vrot.lane.b32.xlu0 %v1974_v16, %s1893_s27 }
   0xc   :  { %v21_v21 = vrot.slane %v20_v18, 1  ;;  %v1773_v22 = vpack.c.bf16 %v133_v20, %v126_v19 }
   0xd   :  { %v618_v2 = vand.u32 4294901760, %v617_v63  ;;  %v632_v10 = vand.u32 4294901760, %v631_v8 }
   0xe   :  { %v22_v23 = vadd.f32 %v21_v21, %v20_v18  ;;  %1774 = vmatpush3.bf16.msra.mxu0 %v1773_v22 }
   0xf   :  { %1775 = vmatprep.subr.bf16.mxu0 %v1890_v0  ;;  %v1794_v6 = vpack.c.bf16 %v618_v2, %v611_v1 }
  0x10   :  { %v24_v24 = vmul.f32 0.125, %v22_v23 }
  0x12   :  { %v25_v25 = vsub.f32 %v14_v4, %v24_v24  ;;  %v623_v4 = vand.u32 4294901760, %v622_v57 }
  0x14   :  { %v26_v26 = vmul.f32 %v25_v25, %v25_v25  ;;  %v624_v7 = vsub.f32 %v622_v57, %v623_v4  ;;  %v1815_v15 = vpack.c.bf16 %v630_v5, %v623_v4 }
  0x16   :  { %v27_v27 = vsel %vm15_vm0, %v26_v26, 0.0  ;;  %v625_v9 = vand.u32 4294901760, %v624_v7 }
  0x17   :  { %v28_v28 = vrot.slane %v27_v27, 4 }
  0x19   :  { %v29_v29 = vadd.f32 %v28_v28, %v27_v27 }
  0x1b   :  { %v30_v30 = vrot.slane %v29_v29, 2 }
  0x1d   :  { %v31_v31 = vadd.f32 %v30_v30, %v29_v29 }
  0x1f   :  { %v32_v32 = vrot.slane %v31_v31, 1 }
  0x21   :  { %v33_v33 = vadd.f32 %v32_v32, %v31_v31 }
  0x23   :  { %v34_v34 = vmul.f32 0.125, %v33_v33  ;;  %v1013_v33 = vld [vmem:[%s2040_s1 + $0x30] sm:$0xff] }
  0x25   :  { %v35_v35 = vadd.f32 1e-05, %v34_v34  ;;  %v1014_v34 = vld [vmem:[%s2040_s1 + $0x38] sm:$0xff] }
  0x27   :  { %1884 = vrsqrt.f32 %v35_v35  ;;  %v1021_v35 = vand.u32 4294901760, %v1013_v33 }
  0x31   :  { %v1885_v36 = vpop.eup %1884 }
  0x32   :  { %v37_v37 = vmul.f32 %v1885_v36, %v25_v25  ;;  %v1024_v36 = vand.u32 4294901760, %v1014_v34 }
  0x34   :  { %v42_v38 = vsel %vm15_vm0, %v37_v37, 0  ;;  %v1101_v37 = vsub.f32 %v1013_v33, %v1021_v35  ;;  %v1824_v51 = vpack.c.bf16 %v1024_v36, %v1021_v35 }
  0x35   :  { %v111_v40 = vand.u32 4294901760, %v42_v38 }
  0x37   :  { %1607 = vmatmul.mubr.f32.vlgmr.msra.gmra.mrb[0].mxu0 %v111_v40  ;;  %v112_v41 = vsub.f32 %v42_v38, %v111_v40  ;;  %v1108_v38 = vsub.f32 %v1014_v34, %v1024_v36 }
  0x38   :  { %1777 = vmatpush3.bf16.msra.mxu0 %v1776_v39  ;;  %1613 = vmatprep.mubr.msk.f32.mxu0 %vm1891_vm1, %v1892_v3  ;;  %v1015_v39 = vld [vmem:[%s2040_s1 + $0x40] sm:$0xff] }
  0x39   :  { %1778 = vmatprep.subr.bf16.mxu0 %v1890_v0  ;;  %v113_v42 = vand.u32 4294901760, %v112_v41  ;;  %v1836_v63 = vpack.c.bf16 %v1108_v38, %v1101_v37 }
  0x3b   :  { %v114_v43 = vsub.f32 %v112_v41, %v113_v42 }
  0x3d   :  { %v115_v44 = vand.u32 4294901760, %v114_v43  ;;  %v1027_v43 = vand.u32 4294901760, %v1015_v39 }
  0x3f   :  { %1614 = vmatmul.mubr.f32.vlgmr.msra.gmra.mrb[0].mxu0 %v112_v41  ;;  %1600 = vmatmul.mubr.f32.vlgmr.msra.gmra.mrb[0].mxu1 %v115_v44  ;;  %v1102_v41 = vand.u32 4294901760, %v1101_v37  ;;  %v1115_v46 = vsub.f32 %v1015_v39, %v1027_v43 }
  0x40   :  { %1780 = vmatpush3.bf16.msra.mxu0 %v1770_v11  ;;  %1620 = vmatprep.mubr.msk.f32.mxu0 %vm1891_vm1, %v1892_v3 }
  0x41   :  { %1781 = vmatprep.subr.bf16.mxu0 %v1890_v0  ;;  %1645 = vmatprep.mubr.msk.f32.mxu1 %vm1891_vm1, %v1892_v3  ;;  %v1116_v48 = vand.u32 4294901760, %v1115_v46  ;;  %v1103_v53 = vsub.f32 %v1101_v37, %v1102_v41 }
  0x42   :  { %1789 = vmatpush3.bf16.msra.mxu1 %v1963_v54 }
  0x43   :  { %1790 = vmatprep.subr.bf16.mxu1 %v1890_v0  ;;  %v1104_v55 = vand.u32 4294901760, %v1103_v53  ;;  %v1117_v58 = vsub.f32 %v1115_v46, %v1116_v48 }
  0x45   :  { %v1118_v60 = vand.u32 4294901760, %v1117_v58 }
  0x46   :  { %1792 = vmatpush3.bf16.msra.mxu1 %v1966_v59 }
  0x47   :  { %1621 = vmatmul.mubr.f32.vlgmr.msra.gmra.mrb[0].mxu0 %v113_v42  ;;  %1793 = vmatprep.subr.bf16.mxu1 %v1890_v0  ;;  %v1109_v42 = vand.u32 4294901760, %v1108_v38 }
  0x48   :  { %1783 = vmatpush3.bf16.msra.mxu0 %v1782_v45  ;;  %1627 = vmatprep.mubr.msk.f32.mxu0 %vm1891_vm1, %v1892_v3 }
  0x49   :  { %1784 = vmatprep.subr.bf16.mxu0 %v1890_v0  ;;  %v1848_v45 = vpack.c.bf16 %v1109_v42, %v1102_v41 }
  0x4f   :  { %1628 = vmatmul.mubr.f32.vlgmr.msra.gmra.mrb[0].mxu0 %v111_v40 }
  0x50   :  { %1786 = vmatpush3.bf16.msra.mxu0 %v1770_v11  ;;  %1634 = vmatprep.mubr.msk.f32.mxu0 %vm1891_vm1, %v1892_v3  ;;  %v1797_v11 = vpack.c.bf16 %v632_v10, %v625_v9 }
  0x51   :  { %1823 = vmatprep.subr.bf16.mxu0 %v1890_v0 }
  0x57   :  { %1635 = vmatmul.mubr.f32.vlgmr.msra.gmra.mrb[0].mxu0 %v111_v40  ;;  %v1016_v40 = vld [vmem:[%s2040_s1 + $0x48] sm:$0xff]  ;;  %s1894_s1 = smov 64  }
  0x58   :  { %1711 = vmatprep.mubr.msk.f32.mxu0 %vm1891_vm1, %v1892_v3  ;;  %v1030_v44 = vand.u32 4294901760, %v1016_v40  ;;  %1825 = vmatpush3.bf16.msra.mxu0 %v1824_v51 }
  0x59   :  { %1826 = vmatprep.subr.bf16.mxu0 %v1890_v0  ;;  %1505 = vrot.lane.b32.xlu0 %v1974_v16, %s1894_s1 }
  0x5a   :  { %v1122_v47 = vsub.f32 %v1016_v40, %v1030_v44  ;;  %v1827_v52 = vpack.c.bf16 %v1030_v44, %v1027_v43 }
  0x5c   :  { %v1123_v49 = vand.u32 4294901760, %v1122_v47  ;;  %1828 = vmatpush3.bf16.msra.mxu0 %v1827_v52  ;;  %v1839_v1 = vpack.c.bf16 %v1122_v47, %v1115_v46 }
  0x5d   :  { %1829 = vmatprep.subr.bf16.mxu0 %v1890_v0 }
  0x5e   :  { %v1851_v50 = vpack.c.bf16 %v1123_v49, %v1116_v48 }
  0x7d   :  { %v521_v2 = vpop.permute.xlu0 %520 }
 0x112   :  { %v117_v17 = vpop.f32.mrb[0].mxu1 }
 0x113   :  { %v1601_v18 = vpop.f32.mrb[1].mxu1 }
 0x12a   :  { %v499_v19 = vpop.f32.mrb[0].mxu0 }
 0x12b   :  { %v1859_v20 = vadd.f32 %v499_v19, %v117_v17  ;;  %v1636_v21 = vpop.f32.mrb[1].mxu0 }
 0x12d   :  { %v509_v22 = vsub.f32 %v1859_v20, %v1974_v16 }
 0x12f   :  { %v1516_v23 = vmul.f32 -1.442695, %v509_v22 }
 0x131   :  { %1886 = vpow2.f32 %v1516_v23 }
 0x13b   :  { %v1887_v24 = vpop.eup %1886 }
 0x13c   :  { %v513_v25 = vadd.f32 1.0, %v1887_v24 }
 0x13e   :  { %1888 = vrcp.f32 %v513_v25 }
 0x148   :  { %v1889_v26 = vpop.eup %1888 }
 0x149   :  { %v525_v27 = vsel %vm523_vm2, %v1889_v26, 0 }
 0x14a   :  { %v596_v28 = vand.u32 4294901760, %v525_v27 }
 0x14c   :  { %v597_v29 = vsub.f32 %v525_v27, %v596_v28 }
 0x14e   :  { %v598_v30 = vand.u32 4294901760, %v597_v29 }
 0x150   :  { %v599_v31 = vsub.f32 %v597_v29, %v598_v30 }
 0x152   :  { %v600_v32 = vand.u32 4294901760, %v599_v31 }
 0x154   :  { %1646 = vmatmul.mubr.f32.vlgmr.msra.gmra.mrb[2].mxu1 %v600_v32 }
 0x155   :  { %1795 = vmatpush3.bf16.msra.mxu1 %v1794_v6  ;;  %1656 = vmatprep.mubr.msk.f32.mxu1 %vm1891_vm1, %v1892_v3 }
 0x156   :  { %1796 = vmatprep.subr.bf16.mxu1 %v1890_v0 }
 0x159   :  { %1798 = vmatpush3.bf16.msra.mxu1 %v1797_v11 }
 0x15a   :  { %1799 = vmatprep.subr.bf16.mxu1 %v1890_v0 }
 0x15c   :  { %1657 = vmatmul.mubr.f32.vlgmr.msra.gmra.mrb[2].mxu1 %v596_v28 }
 0x15d   :  { %1801 = vmatpush3.bf16.msra.mxu1 %v1800_v12  ;;  %1667 = vmatprep.mubr.msk.f32.mxu1 %vm1891_vm1, %v1892_v3 }
 0x15e   :  { %1802 = vmatprep.subr.bf16.mxu1 %v1890_v0 }
 0x161   :  { %1804 = vmatpush3.bf16.msra.mxu1 %v1803_v13 }
 0x162   :  { %1805 = vmatprep.subr.bf16.mxu1 %v1890_v0 }
 0x164   :  { %1668 = vmatmul.mubr.f32.vlgmr.msra.gmra.mrb[2].mxu1 %v597_v29 }
 0x165   :  { %1807 = vmatpush3.bf16.msra.mxu1 %v1963_v54  ;;  %1678 = vmatprep.mubr.msk.f32.mxu1 %vm1891_vm1, %v1892_v3 }
 0x166   :  { %1808 = vmatprep.subr.bf16.mxu1 %v1890_v0 }
 0x169   :  { %1810 = vmatpush3.bf16.msra.mxu1 %v1966_v59 }
 0x16a   :  { %1811 = vmatprep.subr.bf16.mxu1 %v1890_v0 }
 0x16c   :  { %1679 = vmatmul.mubr.f32.vlgmr.msra.gmra.mrb[2].mxu1 %v598_v30 }
 0x16d   :  { %1813 = vmatpush3.bf16.msra.mxu1 %v1812_v14  ;;  %1689 = vmatprep.mubr.msk.f32.mxu1 %vm1891_vm1, %v1892_v3 }
 0x16e   :  { %1814 = vmatprep.subr.bf16.mxu1 %v1890_v0 }
 0x171   :  { %1816 = vmatpush3.bf16.msra.mxu1 %v1815_v15 }
 0x172   :  { %1817 = vmatprep.subr.bf16.mxu1 %v1890_v0 }
 0x174   :  { %1690 = vmatmul.mubr.f32.vlgmr.msra.gmra.mrb[2].mxu1 %v596_v28 }
 0x175   :  { %1819 = vmatpush3.bf16.msra.mxu1 %v1963_v54  ;;  %1700 = vmatprep.mubr.msk.f32.mxu1 %vm1891_vm1, %v1892_v3  ;;  %v1110_v54 = vsub.f32 %v1108_v38, %v1109_v42 }
 0x176   :  { %1820 = vmatprep.subr.bf16.mxu1 %v1890_v0 }
 0x177   :  { %v1111_v56 = vand.u32 4294901760, %v1110_v54 }
 0x179   :  { %1822 = vmatpush3.bf16.msra.mxu1 %v1966_v59  ;;  %v1830_v57 = vpack.c.bf16 %v1111_v56, %v1104_v55  ;;  %v1124_v59 = vsub.f32 %v1122_v47, %v1123_v49 }
 0x17a   :  { %1847 = vmatprep.subr.bf16.mxu1 %v1890_v0 }
 0x17b   :  { %v1125_v61 = vand.u32 4294901760, %v1124_v59 }
 0x17c   :  { %1701 = vmatmul.mubr.f32.vlgmr.msra.gmra.mrb[2].mxu1 %v596_v28 }
 0x17d   :  { %1755 = vmatprep.mubr.msk.f32.mxu1 %vm1891_vm1, %v1892_v3  ;;  %1849 = vmatpush3.bf16.msra.mxu1 %v1848_v45  ;;  %v1833_v62 = vpack.c.bf16 %v1125_v61, %v1118_v60 }
 0x17e   :  { %1850 = vmatprep.subr.bf16.mxu1 %v1890_v0 }
 0x181   :  { %1852 = vmatpush3.bf16.msra.mxu1 %v1851_v50 }
 0x24f   :  { %v1008_v4 = vpop.f32.mrb[2].mxu1 }
 0x250   :  { %v1860_v5 = vadd.f32 %v1008_v4, %v521_v2  ;;  %v1702_v6 = vpop.f32.mrb[3].mxu1 }
 0x252   :  { %v1012_v7 = vmax.f32 %v1860_v5, 0.0 }
 0x254   :  { %v1018_v8 = vsel %vm523_vm2, %v1012_v7, 0 }
 0x255   :  { %v1089_v9 = vand.u32 4294901760, %v1018_v8 }
 0x257   :  { %v1090_v10 = vsub.f32 %v1018_v8, %v1089_v9  ;;  %1756 = vmatmul.mubr.f32.vlgmr.msra.gmra.mrb[4].mxu1 %v1089_v9 }
 0x259   :  { %v1091_v11 = vand.u32 4294901760, %v1090_v10 }
 0x25b   :  { %v1092_v12 = vsub.f32 %v1090_v10, %v1091_v11 }
 0x25d   :  { %v1093_v13 = vand.u32 4294901760, %v1092_v12 }
 0x25f   :  { %1712 = vmatmul.mubr.f32.vlgmr.msra.gmra.mrb[2].mxu0 %v1093_v13 }
 0x260   :  { %1831 = vmatpush3.bf16.msra.mxu0 %v1830_v57  ;;  %1722 = vmatprep.mubr.msk.f32.mxu0 %vm1891_vm1, %v1892_v3 }
 0x261   :  { %1832 = vmatprep.subr.bf16.mxu0 %v1890_v0 }
 0x264   :  { %1834 = vmatpush3.bf16.msra.mxu0 %v1833_v62 }
 0x265   :  { %1835 = vmatprep.subr.bf16.mxu0 %v1890_v0 }
 0x267   :  { %1723 = vmatmul.mubr.f32.vlgmr.msra.gmra.mrb[4].mxu0 %v1089_v9 }
 0x268   :  { %1837 = vmatpush3.bf16.msra.mxu0 %v1836_v63  ;;  %1733 = vmatprep.mubr.msk.f32.mxu0 %vm1891_vm1, %v1892_v3 }
 0x269   :  { %1838 = vmatprep.subr.bf16.mxu0 %v1890_v0 }
 0x26c   :  { %1840 = vmatpush3.bf16.msra.mxu0 %v1839_v1 }
 0x26d   :  { %1841 = vmatprep.subr.bf16.mxu0 %v1890_v0 }
 0x26f   :  { %1734 = vmatmul.mubr.f32.vlgmr.msra.gmra.mrb[6].mxu0 %v1090_v10 }
 0x270   :  { %1843 = vmatpush3.bf16.msra.mxu0 %v1824_v51  ;;  %1744 = vmatprep.mubr.msk.f32.mxu0 %vm1891_vm1, %v1892_v3 }
 0x271   :  { %1844 = vmatprep.subr.bf16.mxu0 %v1890_v0 }
 0x274   :  { %1846 = vmatpush3.bf16.msra.mxu0 %v1827_v52 }
 0x275   :  { %1853 = vmatprep.subr.bf16.mxu0 %v1890_v0 }
 0x277   :  { %1745 = vmatmul.mubr.f32.vlgmr.msra.gmra.mrb[8].mxu0 %v1091_v11 }
 0x278   :  { %1855 = vmatpush3.bf16.msra.mxu0 %v1824_v51  ;;  %1766 = vmatprep.mubr.msk.f32.mxu0 %vm1891_vm1, %v1892_v3  ;;  %v1506_v3 = vpop.permute.xlu0 %1505 }
 0x279   :  { %1856 = vmatprep.subr.bf16.mxu0 %v1890_v0 }
 0x27c   :  { %1858 = vmatpush3.bf16.msra.mxu0 %v1827_v52 }
 0x27f   :  { %1767 = vmatmul.mubr.f32.vlgmr.msra.gmra.mrb[10].mxu0 %v1089_v9 }
 0x32a   :  { %v1426_v14 = vpop.f32.mrb[4].mxu1 }
 0x32b   :  { %v1757_v15 = vpop.f32.mrb[5].mxu1 }
 0x332   :  { %v1095_v16 = vpop.f32.mrb[2].mxu0 }
 0x333   :  { %v1713_v17 = vpop.f32.mrb[3].mxu0 }
 0x33a   :  { %v1186_v18 = vpop.f32.mrb[4].mxu0 }
 0x33b   :  { %v1187_v19 = vadd.f32 %v1186_v18, %v1095_v16  ;;  %v1724_v20 = vpop.f32.mrb[5].mxu0 }
 0x342   :  { %v1266_v21 = vpop.f32.mrb[6].mxu0 }
 0x343   :  { %v1267_v22 = vadd.f32 %v1266_v21, %v1187_v19  ;;  %v1735_v23 = vpop.f32.mrb[7].mxu0 }
 0x34a   :  { %v1343_v24 = vpop.f32.mrb[8].mxu0 }
 0x34b   :  { %v1344_v25 = vadd.f32 %v1343_v24, %v1267_v22  ;;  %v1746_v26 = vpop.f32.mrb[9].mxu0 }
 0x34d   :  { %v1427_v27 = vadd.f32 %v1426_v14, %v1344_v25 }
 0x352   :  { %v1501_v28 = vpop.f32.mrb[10].mxu0 }
 0x353   :  { %v1502_v29 = vadd.f32 %v1501_v28, %v1427_v27  ;;  %v1768_v0 = vpop.f32.mrb[11].mxu0 }
 0x355   :  { %v1508_v30 = vadd.f32 %v1506_v3, %v1502_v29 }
 0x357   :  { %1510 = vst.msk [vmem:[%s2043_s3] sm:$0xff] %vm1509_vm3, %v1508_v30 }

</bundles_post_ra>
